<compile_context>
chip_gen: v5e
topology: v5e:2x2
jax: 0.10.0
libtpu: 0.0.40
codegen_flags: <defaults>
</compile_context>

<pallas_src>
import jax
import jax.numpy as jnp
from jax.experimental import pallas as pl
from jax.experimental.pallas import tpu as pltpu


def _source_distance_kernel(diff_ref, out_ref):
    # diff_ref: (C, TB) block of (pred - tgt), coords on sublanes, batch on lanes.
    # out_ref:  (1, TB) lane-dense output slab.
    d = diff_ref[...].astype(jnp.float32)          # in-register promotion (VPU, free)
    s = jnp.sum(d * d, axis=0, keepdims=True)      # tiny cross-sublane reduce -> XLU slot
    out_ref[...] = jnp.sqrt(s).astype(out_ref.dtype)


def source_distance_pallas(pred_xy: jax.Array, tgt_xy: jax.Array,
                           *, max_tile_lanes: int = 65536) -> jax.Array:
    """pred_xy, tgt_xy: (B, C) arrays. Returns (B,) L2 distances (promoted dtype)."""
    B, C = pred_xy.shape
    assert tgt_xy.shape == (B, C), (pred_xy.shape, tgt_xy.shape)
    out_dtype = jnp.result_type(pred_xy.dtype, tgt_xy.dtype)
    if B == 0:
        return jnp.zeros((0,), out_dtype)

    # Single fused wrapper op: subtract + transpose (coords -> sublanes, batch -> lanes).
    diff_t = (pred_xy - tgt_xy).T                  # (C, B)

    LANE = 128
    b_lanes = pl.cdiv(B, LANE) * LANE              # B rounded up to a lane multiple

    if b_lanes <= 2 * LANE:
        # Tiny batch: one small tile, single grid step. Launch overhead dominates
        # regardless; keep the known-good padded-lane layout.
        tb = b_lanes
    else:
        # Large batch: big tiles (HBM-streaming bound, not step-overhead bound) but
        # always >= 2 grid steps so v7x can shard the batch axis across both
        # TensorCores. VMEM is not the constraint here (~few MiB live at tb=65536).
        tb = min(max_tile_lanes, pl.cdiv(pl.cdiv(B, 2), LANE) * LANE)

    padded_B = pl.cdiv(B, tb) * tb
    if padded_B != B:
        # Only for ragged B; common power-of-2 batches skip this op entirely.
        diff_t = jnp.pad(diff_t, ((0, 0), (0, padded_B - B)))

    grid = (padded_B // tb,)

    out = pl.pallas_call(
        _source_distance_kernel,
        out_shape=jax.ShapeDtypeStruct((1, padded_B), out_dtype),
        grid=grid,
        in_specs=[pl.BlockSpec((C, tb), lambda i: (0, i))],
        out_specs=pl.BlockSpec((1, tb), lambda i: (0, i)),
        compiler_params=pltpu.CompilerParams(
            dimension_semantics=("parallel",)),    # batch tiles are independent
    )(diff_t)

    res = out[0]                                   # squeeze only (no copy)
    return res if padded_B == B else res[:B]


def source_distance(model_output: dict, targets: dict) -> jax.Array:
    """Mirror of SourceDistance.forward (mean_reduce defaults to False)."""
    tgt = targets["source_coordinates"]
    if tgt.ndim == 3:                              # (B, n_sources, D) -> first source, xy
        tgt = tgt[:, 0, :2]
    pred = model_output["source_coordinates"]
    return source_distance_pallas(pred, tgt)


if __name__ == "__main__":
    key = jax.random.PRNGKey(0)
    k1, k2 = jax.random.split(key)

    B, S, D = 8, 4, 3
    # model predicts 2-D source coordinates per batch element
    pred = jax.random.normal(k1, (B, 2), dtype=jnp.float32)
    # targets carry (B, n_sources, 3) coordinates; forward takes [:, 0, :2]
    tgt3 = jax.random.normal(k2, (B, S, D), dtype=jnp.float32)

    model_output = {"source_coordinates": pred}
    targets = {"source_coordinates": tgt3}

    dist = source_distance(model_output, targets)
    dist = jax.block_until_ready(dist)

    # reference check in plain JAX
    ref = jnp.sqrt(jnp.sum((pred - tgt3[:, 0, :2]) ** 2, axis=1))
    assert dist.shape == (B,), dist.shape
    assert jnp.allclose(dist, ref, atol=1e-5), (dist, ref)
    print("KERNEL_OK")
</pallas_src>

<mosaic_0001>
module attributes {stable_mosaic.version = 11 : i64} {
  func.func @_source_distance_kernel(%arg0: i32, %arg1: memref<2x128xf32, #tpu.memory_space<vmem>>, %arg2: memref<1x128xf32, #tpu.memory_space<vmem>>) attributes {dimension_semantics = [#tpu.dimension_semantics<parallel>], iteration_bounds = array<i64: 1>, scalar_prefetch = 0 : i64, scratch_operands = 0 : i64, tpu.core_type = #tpu.core_type<tc>, window_params = [{transform_indices = @transform_0, window_bounds = array<i64: 2, 128>}, {transform_indices = @transform_1, window_bounds = array<i64: 1, 128>}]} {
    %c0 = arith.constant 0 : index
    %c0_0 = arith.constant 0 : index
    %0 = vector.load %arg1[%c0, %c0_0] : memref<2x128xf32, #tpu.memory_space<vmem>>, vector<2x128xf32>
    %1 = arith.mulf %0, %0 : vector<2x128xf32>
    %cst = arith.constant dense<0.000000e+00> : vector<128xf32>
    %2 = vector.multi_reduction <add>, %1, %cst [0] : vector<2x128xf32> to vector<128xf32>
    %3 = vector.shape_cast %2 : vector<128xf32> to vector<1x128xf32>
    %4 = math.sqrt %3 : vector<1x128xf32>
    %c0_1 = arith.constant 0 : index
    %c0_2 = arith.constant 0 : index
    %5 = vector.load %arg2[%c0_1, %c0_2] : memref<1x128xf32, #tpu.memory_space<vmem>>, vector<1x128xf32>
    tpu.vector_store %arg2[%c0_1, %c0_2], %4 {strides = array<i32>} : memref<1x128xf32, #tpu.memory_space<vmem>>, vector<1x128xf32>,
    return
  }
  func.func @transform_0(%arg0: i32) -> (i32, i32) {
    %c0_i32 = arith.constant 0 : i32
    %c0_i32_0 = arith.constant 0 : i32
    return %c0_i32, %arg0 : i32, i32
  }
  func.func @transform_1(%arg0: i32) -> (i32, i32) {
    %c0_i32 = arith.constant 0 : i32
    %c0_i32_0 = arith.constant 0 : i32
    return %c0_i32, %arg0 : i32, i32
  }
}

</mosaic_0001>

<bundles_post_ra>
// kernel: tpu_custom_call.1
= control target key start
LH: loop header
LB: loop body
LE: loop exit
PB: predicated region body
PF: predicated region fallthrough
CT: control target
= control target key end

     0   :  { %6 = vsyncpa [#allocation3], 0  ;;  %s137_s0 = inlined_call_operand.hbm [shape: f32[2,128], index: 0, kind: input, shape index: {}]   ;;  %s138_s1 = inlined_call_operand.hbm [shape: f32[1,128], index: 1, kind: output, shape index: {}]  }
   0x1   :  { %7 = vsyncpa [#allocation4], 0  ;;  %s13_s8 = sshll.u32 %s137_s0, 4  ;;  %s119_s9 = smov [#allocation2]   ;;  %s14_s8 = int_to_ptr.hbm [resolvable:$true] %s13_s8 }
   0x2   :  { %s15_s10 = sshll.u32 %s119_s9, 4  ;;  %s16_s10 = int_to_ptr.vmem [resolvable:$true] %s15_s10 }
   0x3   :  { %18 = dma.hbm_to_vmem [thread:$0]  %s14_s8, 32, %s16_s10, [#allocation3]  }
   0x4   :  { %115 = dma.done.wait [#allocation3], 32  }
   0x5   :  { %116 = vsyncadd [#allocation3], 4294967264  ;;  %v23_v0 = vld [vmem:[#allocation2] sm:$0x3]  ;;  %vm25_vm0 = vcmask 1041408   ;;  %s120_s0 = smov [#allocation5]  }
   0x6   :  { %v24_v1 = vmul.f32 %v23_v0, %v23_v0  ;;  %s51_s11 = sshll.u32 %s120_s0, 4  ;;  %s53_s14 = sshll.u32 %s138_s1, 4  ;;  %s52_s11 = int_to_ptr.vmem [resolvable:$true] %s51_s11  ;;  %s54_s14 = int_to_ptr.hbm [resolvable:$true] %s53_s14 }
   0x8   :  { %v26_v2 = vsel %vm25_vm0, %v24_v1, 0.0 }
   0x9   :  { %v27_v3 = vrot.slane %v26_v2, 4 }
   0xb   :  { %v28_v4 = vadd.f32 %v27_v3, %v26_v2 }
   0xd   :  { %v29_v5 = vrot.slane %v28_v4, 2 }
   0xf   :  { %v30_v6 = vadd.f32 %v29_v5, %v28_v4 }
  0x11   :  { %v31_v7 = vrot.slane %v30_v6, 1 }
  0x13   :  { %v32_v8 = vadd.f32 %v31_v7, %v30_v6 }
  0x15   :  { %65 = vrsqrt.f32 %v32_v8  ;;  %vm40_vm1 = vcmp.eq.f32.partialorder %v32_v8, inf  ;;  %v43_v15 = vand.u32 2147483648, %v32_v8  ;;  %vm42_vm2 = vcmp.eq.f32.partialorder %v32_v8, 0.0 }
  0x1b   :  { %v66_v9 = vpop.eup %65 }
  0x1c   :  { %v34_v10 = vmul.f32 %v66_v9, %v32_v8 }
  0x1e   :  { %v35_v11 = vmul.f32 %v66_v9, %v34_v10 }
  0x20   :  { %v36_v12 = vmul.f32 0.5, %v35_v11 }
  0x22   :  { %v37_v13 = vsub.f32 1.5, %v36_v12 }
  0x24   :  { %v38_v14 = vmul.f32 %v66_v9, %v37_v13 }
  0x26   :  { %v39_v16 = vmul.f32 %v38_v14, %v32_v8 }
  0x28   :  { %v41_v17 = vsel %vm40_vm1, %v32_v8, %v39_v16 }
  0x29   :  { %v44_v18 = vsel %vm42_vm2, %v43_v15, %v41_v17 }
  0x2a   :  { %45 = vst [vmem:[#allocation5] sm:$0x1] %v44_v18 }
  0x2b   :  { %56 = dma.vmem_to_hbm [thread:$0]  %s52_s11, 16, %s54_s14, [#allocation4]  }
  0x2c   :  { %117 = dma.done.wait [#allocation4], 16  }
  0x2d   :  { %118 = vsyncadd [#allocation4], 4294967280 }
  0x2e   :  { %61 = vsyncpa [#allocation3], 1 }
  0x2f   :  { %62 = vsyncpa [#allocation4], 1 }

</bundles_post_ra>
